<compile_context>
chip_gen: v6e
topology: v6e:2x2x1
jax: 0.10.0
libtpu: 0.0.40
codegen_flags: <defaults>
</compile_context>

<pallas_src>
import jax
import jax.numpy as jnp
from jax.experimental import pallas as pl
from jax.experimental.pallas import tpu as pltpu


def _chomp_copy_kernel(x_ref, o_ref):
    # Fast path: x_ref and o_ref blocks have identical shapes -> the slice below is
    # the full static view (free) and this is a pure VMEM tile copy.
    # Small-L_out fallback: x_ref's time dim is the full L and the static slice trims
    # the chomped tail in-VMEM.
    o_ref[...] = x_ref[:, : o_ref.shape[1]]


def _sublane_pack(dtype) -> int:
    itemsize = jnp.dtype(dtype).itemsize
    return {4: 8, 2: 16, 1: 32}.get(itemsize, 8)


_TARGET_BLOCK_BYTES = 3 * 1024 * 1024  # ~3 MiB/buffer -> <=12 MiB pipelined footprint


def chomp1d(x: jax.Array, chomp_size: int) -> jax.Array:
    """Pallas equivalent of Chomp1d.forward: x[:, :, :-chomp_size]."""
    assert chomp_size > 0, "chomp_size must be positive (matches PyTorch slice semantics)"
    n, c, l = x.shape
    l_out = l - chomp_size
    assert l_out > 0, "chomp_size must be smaller than the time dimension"

    itemsize = jnp.dtype(x.dtype).itemsize
    sub = _sublane_pack(x.dtype)
    rows = n * c

    # Free for a contiguous (N, C, L) array: fold batch*channel into one row axis.
    x2d = x.reshape(rows, l)

    # ---- time (lane) tile ------------------------------------------------------
    if l_out >= 128:
        # Lane-dense path: multiple of 128, covers only the kept prefix, so the
        # chomped tail is never read from HBM. Final partial output tile is handled
        # by Pallas edge masking (input reads past l_out / L are padded + discarded).
        tl_out = min(2048, (l_out // 128) * 128)
        tl_in = tl_out
    else:
        # Tiny-time fallback: full-extent blocks, trim the tail in-VMEM.
        tl_out = l_out
        tl_in = l

    # ---- row (sublane) tile, sized by byte budget -----------------------------
    tl_block = max(tl_in, tl_out)
    budget_rows = max(1, _TARGET_BLOCK_BYTES // (tl_block * itemsize))
    if budget_rows >= rows:
        tr = rows  # full-extent row block (always legal)
    else:
        tr = max(sub, (budget_rows // sub) * sub)  # sublane-pack multiple; edge masked

    grid = (pl.cdiv(rows, tr), pl.cdiv(l_out, tl_out))

    y2d = pl.pallas_call(
        _chomp_copy_kernel,
        out_shape=jax.ShapeDtypeStruct((rows, l_out), x.dtype),
        grid=grid,
        in_specs=[pl.BlockSpec((tr, tl_in), lambda i, t: (i, t))],
        out_specs=pl.BlockSpec((tr, tl_out), lambda i, t: (i, t)),
        compiler_params=pltpu.CompilerParams(
            dimension_semantics=("parallel", "parallel"),
        ),
    )(x2d)

    return y2d.reshape(n, c, l_out)


if __name__ == "__main__":
    key = jax.random.PRNGKey(0)

    # Small shape consistent with the module: (N, C, L) = (2, 4, 16), chomp 4.
    batch, channels, length = 2, 4, 16
    chomp_size = 4  # e.g. (kernel_size - 1) * dilation in a TCN block
    x = jax.random.normal(key, (batch, channels, length), dtype=jnp.float32)

    y = jax.block_until_ready(chomp1d(x, chomp_size))
    y_ref = x[:, :, :-chomp_size]
    assert y.shape == (batch, channels, length - chomp_size), y.shape
    assert jnp.array_equal(y, y_ref), "Pallas chomp mismatch vs reference slice"

    # Lane-dense tiled path: partial final time tile + padded input edge block.
    x2 = jax.random.normal(jax.random.PRNGKey(1), (2, 16, 640), dtype=jnp.float32)
    y2 = jax.block_until_ready(chomp1d(x2, 5))
    assert jnp.array_equal(y2, x2[:, :, :-5]), "tiled-path mismatch vs reference slice"

    # Rows not a multiple of the sublane pack + non-multiple-of-128 l_out.
    x3 = jax.random.normal(jax.random.PRNGKey(2), (3, 5, 384), dtype=jnp.float32)
    y3 = jax.block_until_ready(chomp1d(x3, 7))
    assert jnp.array_equal(y3, x3[:, :, :-7]), "row-edge path mismatch vs reference slice"

    print("KERNEL_OK")
</pallas_src>

<mosaic_0001>
module attributes {stable_mosaic.version = 11 : i64} {
  func.func @_chomp_copy_kernel(%arg0: i32, %arg1: i32, %arg2: memref<8x16xf32, #tpu.memory_space<vmem>>, %arg3: memref<8x12xf32, #tpu.memory_space<vmem>>) attributes {dimension_semantics = [#tpu.dimension_semantics<parallel>, #tpu.dimension_semantics<parallel>], iteration_bounds = array<i64: 1, 1>, scalar_prefetch = 0 : i64, scratch_operands = 0 : i64, tpu.core_type = #tpu.core_type<tc>, window_params = [{transform_indices = @transform_0, window_bounds = array<i64: 8, 16>}, {transform_indices = @transform_1, window_bounds = array<i64: 8, 12>}]} {
    %c0 = arith.constant 0 : index
    %c0_0 = arith.constant 0 : index
    %0 = vector.load %arg2[%c0, %c0_0] : memref<8x16xf32, #tpu.memory_space<vmem>>, vector<8x12xf32>
    %c0_1 = arith.constant 0 : index
    %c0_2 = arith.constant 0 : index
    %1 = vector.load %arg3[%c0_1, %c0_2] : memref<8x12xf32, #tpu.memory_space<vmem>>, vector<8x12xf32>
    tpu.vector_store %arg3[%c0_1, %c0_2], %0 {strides = array<i32>} : memref<8x12xf32, #tpu.memory_space<vmem>>, vector<8x12xf32>,
    return
  }
  func.func @transform_0(%arg0: i32, %arg1: i32) -> (i32, i32) {
    %c0_i32 = arith.constant 0 : i32
    return %arg0, %arg1 : i32, i32
  }
  func.func @transform_1(%arg0: i32, %arg1: i32) -> (i32, i32) {
    %c0_i32 = arith.constant 0 : i32
    return %arg0, %arg1 : i32, i32
  }
}

</mosaic_0001>

<bundles_post_ra>
// kernel: tpu_custom_call.1
= control target key start
LH: loop header
LB: loop body
LE: loop exit
PB: predicated region body
PF: predicated region fallthrough
CT: control target
= control target key end

     0   :  { %6 = vsyncpa [#allocation3], 0  ;;  %s103_s0 = inlined_call_operand.hbm [shape: f32[8,16], index: 0, kind: input, shape index: {}]   ;;  %s104_s1 = inlined_call_operand.hbm [shape: f32[8,12], index: 1, kind: output, shape index: {}]  }
   0x1   :  { %7 = vsyncpa [#allocation4], 0  ;;  %s85_s6 = smov [#allocation2]  }
   0x2   :  { %s14_s7 = sshll.u32 %s85_s6, 4  ;;  %s15_s7 = int_to_ptr.vmem [resolvable:$true] %s14_s7 }
   0x3   :  { %s49_s8 = scalar_lea.vmem %s15_s7, 128  ;;  %p54_p1 = scmp.lt.s32.totalorder %s15_s7, %s15_s7 }
   0x4   :  { %p50_p0 = scmp.ne.s32.totalorder %s15_s7, %s49_s8  ;;  %p55_p2 = scmp.lt.s32.totalorder %s49_s8, %s49_s8 }
   0x6   :  { %p56_p3 = por %p55_p2, %p54_p1 }
   0x8   :  { %p57_p4 = pnand %p56_p3, %p50_p0 }
   0xa   :  { %60 = shalt.err (!%p57_p4)
}
   0xb   :  { %17 = dma.hbm_to_vmem [thread:$0]  %s103_s0, 128, %s15_s7, [#allocation3]  }
   0xc   :  { %81 = dma.done.wait [#allocation3], 128  }
   0xd   :  { %82 = vsyncadd [#allocation3], 4294967168  ;;  %s86_s11 = smov [#allocation5]   ;;  %vm22_vm0 = vcmask 97280   ;;  %v21_v0 = vld [vmem:[#allocation2] sm:$0xff] }
   0xe   :  { %s30_s12 = sshll.u32 %s86_s11, 4  ;;  %23 = vst.msk [vmem:[#allocation5] sm:$0xff] %vm22_vm0, %v21_v0  ;;  %s31_s12 = int_to_ptr.vmem [resolvable:$true] %s30_s12 }
   0xf   :  { %s61_s13 = scalar_lea.vmem %s31_s12, 128  ;;  %p66_p6 = scmp.lt.s32.totalorder %s31_s12, %s31_s12 }
  0x10   :  { %p62_p5 = scmp.ne.s32.totalorder %s31_s12, %s61_s13  ;;  %p67_p7 = scmp.lt.s32.totalorder %s61_s13, %s61_s13 }
  0x12   :  { %p68_p8 = por %p67_p7, %p66_p6 }
  0x14   :  { %p69_p9 = pnand %p68_p8, %p62_p5 }
  0x16   :  { %72 = shalt.err (!%p69_p9)
}
  0x17   :  { %33 = dma.vmem_to_hbm [thread:$0]  %s31_s12, 128, %s104_s1, [#allocation4]  }
  0x18   :  { %83 = dma.done.wait [#allocation4], 128  }
  0x19   :  { %84 = vsyncadd [#allocation4], 4294967168 }
  0x1a   :  { %37 = vsyncpa [#allocation3], 1 }
  0x1b   :  { %38 = vsyncpa [#allocation4], 1 }

</bundles_post_ra>
